<compile_context>
chip_gen: v7x
topology: tpu7x:2x2x1
jax: 0.10.0
libtpu: 0.0.40
codegen_flags: <defaults>
</compile_context>

<pallas_src>
import functools

import jax
import jax.numpy as jnp
from jax import lax
from jax.experimental import pallas as pl
from jax.experimental.pallas import tpu as pltpu


# ----------------------------- Pallas kernel ------------------------------- #

def _rnn_hp_fused_kernel(tok_ref, emb_ref, w_ih0_ref, w_ihs_ref, w_hhs_ref,
                         b_ref, h0_ref, fc_w_ref, fc_b_ref,
                         logits_ref, hT_ref, *, seq, batch, num_layers):
    """Fused embedding + multi-layer tanh RNN + FC.

    tok_ref   : (T*B, 1) int32   time-major flat token ids (row = t*B + b)
    emb_ref   : (V, E)           embedding table
    w_ih0_ref : (E, H)           layer-0 input weights (pre-transposed)
    w_ihs_ref : (max(L-1,1), H, H) input weights, layers 1..L-1 (dummy if L==1)
    w_hhs_ref : (L, H, H)        recurrent weights
    b_ref     : (L, 1, H)        combined biases (b_ih + b_hh)
    h0_ref    : (L, B, H)        initial hidden states
    fc_w_ref  : (H, V), fc_b_ref : (1, V)
    logits_ref: (T*B, V)         time-major flat logits
    hT_ref    : (L, B, H)        final hidden states
    """
    n_rows = seq * batch
    vocab = emb_ref.shape[0]

    # Embedding lookup fused as a one-hot matmul (MXU-friendly, no gather).
    tok = tok_ref[...]                                           # (T*B, 1)
    col = lax.broadcasted_iota(jnp.int32, (n_rows, vocab), 1)
    onehot = (col == tok).astype(jnp.float32)                    # (T*B, V)
    x = jnp.dot(onehot, emb_ref[...],
                preferred_element_type=jnp.float32)              # (T*B, E)

    for layer in range(num_layers):                              # static unroll
        w_ih = w_ih0_ref[...] if layer == 0 else w_ihs_ref[layer - 1]
        w_hh = w_hhs_ref[layer]                                  # (H, H)
        bias = b_ref[layer]                                      # (1, H)

        # Hoisted input projection + bias: one matmul for all timesteps.
        pre = jnp.dot(x, w_ih, preferred_element_type=jnp.float32) + bias

        h = h0_ref[layer]                                        # (B, H)
        hs = []
        for t in range(seq):                                     # static unroll
            h = jnp.tanh(
                pre[t * batch:(t + 1) * batch, :]
                + jnp.dot(h, w_hh, preferred_element_type=jnp.float32))
            hs.append(h)
        hT_ref[layer] = h
        x = jnp.concatenate(hs, axis=0)                          # (T*B, H)
        # (inter-layer dropout: identity in eval mode)

    # Fused final projection, single contiguous store.
    logits_ref[...] = (
        jnp.dot(x, fc_w_ref[...], preferred_element_type=jnp.float32)
        + fc_b_ref[...])


# ------------------------------ JAX wrapper -------------------------------- #

_VMEM = pl.BlockSpec(memory_space=pltpu.MemorySpace.VMEM)


@functools.partial(jax.jit, static_argnames=("num_layers",))
def rnn_hp_forward(params, x_tokens, hidden, *, num_layers):
    """Forward pass of RNN_HP.

    x_tokens : (B, T) int32 token ids
    hidden   : (num_layers, B, H) float32
    returns  : (output (B, T, vocab), hidden (num_layers, B, H))
    """
    batch, seq = x_tokens.shape
    vocab = params["embedding"].shape[0]
    hidden_dim = params["w_hhs"].shape[-1]

    # Time-major flat token ids: row (t*B + b) <-> (t, b).
    tok_tm = jnp.transpose(x_tokens, (1, 0)).reshape(seq * batch, 1)
    tok_tm = tok_tm.astype(jnp.int32)

    kernel = functools.partial(
        _rnn_hp_fused_kernel, seq=seq, batch=batch, num_layers=num_layers)

    logits_tm, h_t = pl.pallas_call(
        kernel,
        out_shape=(
            jax.ShapeDtypeStruct((seq * batch, vocab), jnp.float32),
            jax.ShapeDtypeStruct((num_layers, batch, hidden_dim), jnp.float32),
        ),
        in_specs=[_VMEM] * 9,
        out_specs=(_VMEM, _VMEM),
    )(tok_tm, params["embedding"], params["w_ih0"], params["w_ihs"],
      params["w_hhs"], params["b"], hidden, params["fc_w"], params["fc_b"])

    # (T*B, V) time-major -> (B, T, V) batch-major (tiny permute, plain JAX).
    output = jnp.transpose(logits_tm.reshape(seq, batch, vocab), (1, 0, 2))
    return output, h_t


# ------------------------------- parameters -------------------------------- #

def init_params(key, vocab_size, embedding_dim, hidden_dim, num_layers):
    """Deterministic synthetic parameters (matches nn.Module shapes)."""
    keys = jax.random.split(key, 3 + 4 * num_layers)
    k = 1.0 / jnp.sqrt(hidden_dim)
    emb = jax.random.normal(keys[0], (vocab_size, embedding_dim), jnp.float32)
    fc_w = jax.random.uniform(keys[1], (hidden_dim, vocab_size), jnp.float32,
                              -k, k)
    fc_b = jax.random.uniform(keys[2], (1, vocab_size), jnp.float32, -k, k)

    w_ih0 = None
    w_ihs, w_hhs, bs = [], [], []
    for layer in range(num_layers):
        in_dim = embedding_dim if layer == 0 else hidden_dim
        k0, k1, k2, k3 = keys[3 + 4 * layer: 3 + 4 * (layer + 1)]
        w_ih = jax.random.uniform(k0, (in_dim, hidden_dim), jnp.float32, -k, k)
        if layer == 0:
            w_ih0 = w_ih
        else:
            w_ihs.append(w_ih)
        w_hhs.append(
            jax.random.uniform(k1, (hidden_dim, hidden_dim), jnp.float32, -k, k))
        b_ih = jax.random.uniform(k2, (1, hidden_dim), jnp.float32, -k, k)
        b_hh = jax.random.uniform(k3, (1, hidden_dim), jnp.float32, -k, k)
        bs.append(b_ih + b_hh)

    if w_ihs:
        w_ihs = jnp.stack(w_ihs, axis=0)
    else:  # num_layers == 1: dummy, never indexed by the kernel
        w_ihs = jnp.zeros((1, hidden_dim, hidden_dim), jnp.float32)

    return {
        "embedding": emb,
        "w_ih0": w_ih0,
        "w_ihs": w_ihs,
        "w_hhs": jnp.stack(w_hhs, axis=0),
        "b": jnp.stack(bs, axis=0),          # (L, 1, H)
        "fc_w": fc_w,
        "fc_b": fc_b,
    }


# ---------------------------- pure-JAX reference ---------------------------- #

def _reference_forward(params, x_tokens, hidden, num_layers):
    emb = jnp.take(params["embedding"], x_tokens, axis=0)        # (B, T, E)
    layer_in = jnp.transpose(emb, (1, 0, 2))                     # (T, B, E)
    new_hidden = []
    for layer in range(num_layers):
        w_ih = params["w_ih0"] if layer == 0 else params["w_ihs"][layer - 1]
        w_hh = params["w_hhs"][layer]
        b = params["b"][layer]

        def step(h, x_t, w_ih=w_ih, w_hh=w_hh, b=b):
            h_new = jnp.tanh(x_t @ w_ih + h @ w_hh + b)
            return h_new, h_new

        h_t, outs = lax.scan(step, hidden[layer], layer_in)
        new_hidden.append(h_t)
        layer_in = outs
    rnn_out = jnp.transpose(layer_in, (1, 0, 2))                 # (B, T, H)
    logits = rnn_out @ params["fc_w"] + params["fc_b"]
    return logits, jnp.stack(new_hidden, axis=0)


# ---------------------------------- main ----------------------------------- #

if __name__ == "__main__":
    # HyperParams analogue (small, deterministic).
    vocab_size = 32
    batch_size = 2
    seq_length = 8
    hidden_dim = 32
    num_layers = 2
    embedding_dim = 16

    key = jax.random.PRNGKey(0)
    k_param, k_tok = jax.random.split(key)

    params = init_params(k_param, vocab_size, embedding_dim, hidden_dim,
                         num_layers)
    x = jax.random.randint(k_tok, (batch_size, seq_length), 0, vocab_size,
                           dtype=jnp.int32)
    h0 = jnp.zeros((num_layers, batch_size, hidden_dim), jnp.float32)

    out, hidden = rnn_hp_forward(params, x, h0, num_layers=num_layers)
    out = jax.block_until_ready(out)
    hidden = jax.block_until_ready(hidden)

    assert out.shape == (batch_size, seq_length, vocab_size)
    assert hidden.shape == (num_layers, batch_size, hidden_dim)

    ref_out, ref_hidden = _reference_forward(params, x, h0, num_layers)
    assert jnp.allclose(out, ref_out, atol=1e-5, rtol=1e-5)
    assert jnp.allclose(hidden, ref_hidden, atol=1e-5, rtol=1e-5)

    print("KERNEL_OK")
</pallas_src>

<mosaic_0001>
module attributes {stable_mosaic.version = 11 : i64} {
  func.func @_rnn_hp_fused_kernel(%arg0: memref<16x1xi32, #tpu.memory_space<vmem>>, %arg1: memref<32x16xf32, #tpu.memory_space<vmem>>, %arg2: memref<16x32xf32, #tpu.memory_space<vmem>>, %arg3: memref<1x32x32xf32, #tpu.memory_space<vmem>>, %arg4: memref<2x32x32xf32, #tpu.memory_space<vmem>>, %arg5: memref<2x1x32xf32, #tpu.memory_space<vmem>>, %arg6: memref<2x2x32xf32, #tpu.memory_space<vmem>>, %arg7: memref<32x32xf32, #tpu.memory_space<vmem>>, %arg8: memref<1x32xf32, #tpu.memory_space<vmem>>, %arg9: memref<16x32xf32, #tpu.memory_space<vmem>>, %arg10: memref<2x2x32xf32, #tpu.memory_space<vmem>>) attributes {dimension_semantics = [], scalar_prefetch = 0 : i64, scratch_operands = 0 : i64, tpu.core_type = #tpu.core_type<tc>} {
    %c0 = arith.constant 0 : index
    %c0_0 = arith.constant 0 : index
    %0 = vector.load %arg0[%c0, %c0_0] : memref<16x1xi32, #tpu.memory_space<vmem>>, vector<16x1xi32>
    %1 = tpu.iota {dimensions = array<i32: 1>} : vector<16x32xi32>
    %2 = vector.broadcast %0 : vector<16x1xi32> to vector<16x32xi32>
    %3 = arith.cmpi eq, %1, %2 : vector<16x32xi32>
    %4 = arith.extui %3 : vector<16x32xi1> to vector<16x32xi32>
    %5 = arith.sitofp %4 : vector<16x32xi32> to vector<16x32xf32>
    %c0_1 = arith.constant 0 : index
    %c0_2 = arith.constant 0 : index
    %6 = vector.load %arg1[%c0_1, %c0_2] : memref<32x16xf32, #tpu.memory_space<vmem>>, vector<32x16xf32>
    %cst = arith.constant dense<0.000000e+00> : vector<16x16xf32>
    %7 = tpu.matmul %5, %6, %cst {dimension_numbers = #tpu.dot_dimension_numbers<[1], [0], [0], [1], [0, 0, 1, 1], [], []>} : vector<16x32xf32>, vector<32x16xf32>, vector<16x16xf32> -> vector<16x16xf32>
    %c0_3 = arith.constant 0 : index
    %c0_4 = arith.constant 0 : index
    %8 = vector.load %arg2[%c0_3, %c0_4] : memref<16x32xf32, #tpu.memory_space<vmem>>, vector<16x32xf32>
    %c0_5 = arith.constant 0 : index
    %c0_6 = arith.constant 0 : index
    %c0_7 = arith.constant 0 : index
    %9 = vector.load %arg4[%c0_5, %c0_6, %c0_7] : memref<2x32x32xf32, #tpu.memory_space<vmem>>, vector<1x32x32xf32>
    %10 = vector.shape_cast %9 : vector<1x32x32xf32> to vector<32x32xf32>
    %c0_8 = arith.constant 0 : index
    %c0_9 = arith.constant 0 : index
    %c0_10 = arith.constant 0 : index
    %11 = vector.load %arg5[%c0_8, %c0_9, %c0_10] : memref<2x1x32xf32, #tpu.memory_space<vmem>>, vector<1x1x32xf32>
    %12 = vector.shape_cast %11 : vector<1x1x32xf32> to vector<1x32xf32>
    %cst_11 = arith.constant dense<0.000000e+00> : vector<16x32xf32>
    %13 = tpu.matmul %7, %8, %cst_11 {dimension_numbers = #tpu.dot_dimension_numbers<[1], [0], [0], [1], [0, 0, 1, 1], [], []>} : vector<16x16xf32>, vector<16x32xf32>, vector<16x32xf32> -> vector<16x32xf32>
    %14 = vector.broadcast %12 : vector<1x32xf32> to vector<16x32xf32>
    %15 = arith.addf %13, %14 : vector<16x32xf32>
    %c0_12 = arith.constant 0 : index
    %c0_13 = arith.constant 0 : index
    %c0_14 = arith.constant 0 : index
    %16 = vector.load %arg6[%c0_12, %c0_13, %c0_14] : memref<2x2x32xf32, #tpu.memory_space<vmem>>, vector<1x2x32xf32>
    %17 = vector.shape_cast %16 : vector<1x2x32xf32> to vector<2x32xf32>
    %18 = vector.extract_strided_slice %15 {offsets = [0, 0], sizes = [2, 32], strides = [1, 1]} : vector<16x32xf32> to vector<2x32xf32>
    %cst_15 = arith.constant dense<0.000000e+00> : vector<2x32xf32>
    %19 = tpu.matmul %17, %10, %cst_15 {dimension_numbers = #tpu.dot_dimension_numbers<[1], [0], [0], [1], [0, 0, 1, 1], [], []>} : vector<2x32xf32>, vector<32x32xf32>, vector<2x32xf32> -> vector<2x32xf32>
    %20 = arith.addf %18, %19 : vector<2x32xf32>
    %21 = math.tanh %20 : vector<2x32xf32>
    %22 = vector.extract_strided_slice %15 {offsets = [2, 0], sizes = [2, 32], strides = [1, 1]} : vector<16x32xf32> to vector<2x32xf32>
    %cst_16 = arith.constant dense<0.000000e+00> : vector<2x32xf32>
    %23 = tpu.matmul %21, %10, %cst_16 {dimension_numbers = #tpu.dot_dimension_numbers<[1], [0], [0], [1], [0, 0, 1, 1], [], []>} : vector<2x32xf32>, vector<32x32xf32>, vector<2x32xf32> -> vector<2x32xf32>
    %24 = arith.addf %22, %23 : vector<2x32xf32>
    %25 = math.tanh %24 : vector<2x32xf32>
    %26 = vector.extract_strided_slice %15 {offsets = [4, 0], sizes = [2, 32], strides = [1, 1]} : vector<16x32xf32> to vector<2x32xf32>
    %cst_17 = arith.constant dense<0.000000e+00> : vector<2x32xf32>
    %27 = tpu.matmul %25, %10, %cst_17 {dimension_numbers = #tpu.dot_dimension_numbers<[1], [0], [0], [1], [0, 0, 1, 1], [], []>} : vector<2x32xf32>, vector<32x32xf32>, vector<2x32xf32> -> vector<2x32xf32>
    %28 = arith.addf %26, %27 : vector<2x32xf32>
    %29 = math.tanh %28 : vector<2x32xf32>
    %30 = vector.extract_strided_slice %15 {offsets = [6, 0], sizes = [2, 32], strides = [1, 1]} : vector<16x32xf32> to vector<2x32xf32>
    %cst_18 = arith.constant dense<0.000000e+00> : vector<2x32xf32>
    %31 = tpu.matmul %29, %10, %cst_18 {dimension_numbers = #tpu.dot_dimension_numbers<[1], [0], [0], [1], [0, 0, 1, 1], [], []>} : vector<2x32xf32>, vector<32x32xf32>, vector<2x32xf32> -> vector<2x32xf32>
    %32 = arith.addf %30, %31 : vector<2x32xf32>
    %33 = math.tanh %32 : vector<2x32xf32>
    %34 = vector.extract_strided_slice %15 {offsets = [8, 0], sizes = [2, 32], strides = [1, 1]} : vector<16x32xf32> to vector<2x32xf32>
    %cst_19 = arith.constant dense<0.000000e+00> : vector<2x32xf32>
    %35 = tpu.matmul %33, %10, %cst_19 {dimension_numbers = #tpu.dot_dimension_numbers<[1], [0], [0], [1], [0, 0, 1, 1], [], []>} : vector<2x32xf32>, vector<32x32xf32>, vector<2x32xf32> -> vector<2x32xf32>
    %36 = arith.addf %34, %35 : vector<2x32xf32>
    %37 = math.tanh %36 : vector<2x32xf32>
    %38 = vector.extract_strided_slice %15 {offsets = [10, 0], sizes = [2, 32], strides = [1, 1]} : vector<16x32xf32> to vector<2x32xf32>
    %cst_20 = arith.constant dense<0.000000e+00> : vector<2x32xf32>
    %39 = tpu.matmul %37, %10, %cst_20 {dimension_numbers = #tpu.dot_dimension_numbers<[1], [0], [0], [1], [0, 0, 1, 1], [], []>} : vector<2x32xf32>, vector<32x32xf32>, vector<2x32xf32> -> vector<2x32xf32>
    %40 = arith.addf %38, %39 : vector<2x32xf32>
    %41 = math.tanh %40 : vector<2x32xf32>
    %42 = vector.extract_strided_slice %15 {offsets = [12, 0], sizes = [2, 32], strides = [1, 1]} : vector<16x32xf32> to vector<2x32xf32>
    %cst_21 = arith.constant dense<0.000000e+00> : vector<2x32xf32>
    %43 = tpu.matmul %41, %10, %cst_21 {dimension_numbers = #tpu.dot_dimension_numbers<[1], [0], [0], [1], [0, 0, 1, 1], [], []>} : vector<2x32xf32>, vector<32x32xf32>, vector<2x32xf32> -> vector<2x32xf32>
    %44 = arith.addf %42, %43 : vector<2x32xf32>
    %45 = math.tanh %44 : vector<2x32xf32>
    %46 = vector.extract_strided_slice %15 {offsets = [14, 0], sizes = [2, 32], strides = [1, 1]} : vector<16x32xf32> to vector<2x32xf32>
    %cst_22 = arith.constant dense<0.000000e+00> : vector<2x32xf32>
    %47 = tpu.matmul %45, %10, %cst_22 {dimension_numbers = #tpu.dot_dimension_numbers<[1], [0], [0], [1], [0, 0, 1, 1], [], []>} : vector<2x32xf32>, vector<32x32xf32>, vector<2x32xf32> -> vector<2x32xf32>
    %48 = arith.addf %46, %47 : vector<2x32xf32>
    %49 = math.tanh %48 : vector<2x32xf32>
    %c0_23 = arith.constant 0 : index
    %c0_24 = arith.constant 0 : index
    %c0_25 = arith.constant 0 : index
    %50 = vector.load %arg10[%c0_23, %c0_24, %c0_25] : memref<2x2x32xf32, #tpu.memory_space<vmem>>, vector<1x2x32xf32>
    %51 = vector.shape_cast %50 : vector<1x2x32xf32> to vector<2x32xf32>
    %52 = vector.shape_cast %49 : vector<2x32xf32> to vector<1x2x32xf32>
    tpu.vector_store %arg10[%c0_23, %c0_24, %c0_25], %52 {strides = array<i32>} : memref<2x2x32xf32, #tpu.memory_space<vmem>>, vector<1x2x32xf32>,
    %53 = tpu.concatenate %21, %25, %29, %33, %37, %41, %45, %49 in 0 : vector<2x32xf32>, vector<2x32xf32>, vector<2x32xf32>, vector<2x32xf32>, vector<2x32xf32>, vector<2x32xf32>, vector<2x32xf32>, vector<2x32xf32> -> vector<16x32xf32>
    %c0_26 = arith.constant 0 : index
    %c0_27 = arith.constant 0 : index
    %c0_28 = arith.constant 0 : index
    %54 = vector.load %arg3[%c0_26, %c0_27, %c0_28] : memref<1x32x32xf32, #tpu.memory_space<vmem>>, vector<1x32x32xf32>
    %55 = vector.shape_cast %54 : vector<1x32x32xf32> to vector<32x32xf32>
    %c1 = arith.constant 1 : index
    %c0_29 = arith.constant 0 : index
    %c0_30 = arith.constant 0 : index
    %56 = vector.load %arg4[%c1, %c0_29, %c0_30] : memref<2x32x32xf32, #tpu.memory_space<vmem>>, vector<1x32x32xf32>
    %57 = vector.shape_cast %56 : vector<1x32x32xf32> to vector<32x32xf32>
    %c1_31 = arith.constant 1 : index
    %c0_32 = arith.constant 0 : index
    %c0_33 = arith.constant 0 : index
    %58 = vector.load %arg5[%c1_31, %c0_32, %c0_33] : memref<2x1x32xf32, #tpu.memory_space<vmem>>, vector<1x1x32xf32>
    %59 = vector.shape_cast %58 : vector<1x1x32xf32> to vector<1x32xf32>
    %cst_34 = arith.constant dense<0.000000e+00> : vector<16x32xf32>
    %60 = tpu.matmul %53, %55, %cst_34 {dimension_numbers = #tpu.dot_dimension_numbers<[1], [0], [0], [1], [0, 0, 1, 1], [], []>} : vector<16x32xf32>, vector<32x32xf32>, vector<16x32xf32> -> vector<16x32xf32>
    %61 = vector.broadcast %59 : vector<1x32xf32> to vector<16x32xf32>
    %62 = arith.addf %60, %61 : vector<16x32xf32>
    %c1_35 = arith.constant 1 : index
    %c0_36 = arith.constant 0 : index
    %c0_37 = arith.constant 0 : index
    %63 = vector.load %arg6[%c1_35, %c0_36, %c0_37] : memref<2x2x32xf32, #tpu.memory_space<vmem>>, vector<1x2x32xf32>
    %64 = vector.shape_cast %63 : vector<1x2x32xf32> to vector<2x32xf32>
    %65 = vector.extract_strided_slice %62 {offsets = [0, 0], sizes = [2, 32], strides = [1, 1]} : vector<16x32xf32> to vector<2x32xf32>
    %cst_38 = arith.constant dense<0.000000e+00> : vector<2x32xf32>
    %66 = tpu.matmul %64, %57, %cst_38 {dimension_numbers = #tpu.dot_dimension_numbers<[1], [0], [0], [1], [0, 0, 1, 1], [], []>} : vector<2x32xf32>, vector<32x32xf32>, vector<2x32xf32> -> vector<2x32xf32>
    %67 = arith.addf %65, %66 : vector<2x32xf32>
    %68 = math.tanh %67 : vector<2x32xf32>
    %69 = vector.extract_strided_slice %62 {offsets = [2, 0], sizes = [2, 32], strides = [1, 1]} : vector<16x32xf32> to vector<2x32xf32>
    %cst_39 = arith.constant dense<0.000000e+00> : vector<2x32xf32>
    %70 = tpu.matmul %68, %57, %cst_39 {dimension_numbers = #tpu.dot_dimension_numbers<[1], [0], [0], [1], [0, 0, 1, 1], [], []>} : vector<2x32xf32>, vector<32x32xf32>, vector<2x32xf32> -> vector<2x32xf32>
    %71 = arith.addf %69, %70 : vector<2x32xf32>
    %72 = math.tanh %71 : vector<2x32xf32>
    %73 = vector.extract_strided_slice %62 {offsets = [4, 0], sizes = [2, 32], strides = [1, 1]} : vector<16x32xf32> to vector<2x32xf32>
    %cst_40 = arith.constant dense<0.000000e+00> : vector<2x32xf32>
    %74 = tpu.matmul %72, %57, %cst_40 {dimension_numbers = #tpu.dot_dimension_numbers<[1], [0], [0], [1], [0, 0, 1, 1], [], []>} : vector<2x32xf32>, vector<32x32xf32>, vector<2x32xf32> -> vector<2x32xf32>
    %75 = arith.addf %73, %74 : vector<2x32xf32>
    %76 = math.tanh %75 : vector<2x32xf32>
    %77 = vector.extract_strided_slice %62 {offsets = [6, 0], sizes = [2, 32], strides = [1, 1]} : vector<16x32xf32> to vector<2x32xf32>
    %cst_41 = arith.constant dense<0.000000e+00> : vector<2x32xf32>
    %78 = tpu.matmul %76, %57, %cst_41 {dimension_numbers = #tpu.dot_dimension_numbers<[1], [0], [0], [1], [0, 0, 1, 1], [], []>} : vector<2x32xf32>, vector<32x32xf32>, vector<2x32xf32> -> vector<2x32xf32>
    %79 = arith.addf %77, %78 : vector<2x32xf32>
    %80 = math.tanh %79 : vector<2x32xf32>
    %81 = vector.extract_strided_slice %62 {offsets = [8, 0], sizes = [2, 32], strides = [1, 1]} : vector<16x32xf32> to vector<2x32xf32>
    %cst_42 = arith.constant dense<0.000000e+00> : vector<2x32xf32>
    %82 = tpu.matmul %80, %57, %cst_42 {dimension_numbers = #tpu.dot_dimension_numbers<[1], [0], [0], [1], [0, 0, 1, 1], [], []>} : vector<2x32xf32>, vector<32x32xf32>, vector<2x32xf32> -> vector<2x32xf32>
    %83 = arith.addf %81, %82 : vector<2x32xf32>
    %84 = math.tanh %83 : vector<2x32xf32>
    %85 = vector.extract_strided_slice %62 {offsets = [10, 0], sizes = [2, 32], strides = [1, 1]} : vector<16x32xf32> to vector<2x32xf32>
    %cst_43 = arith.constant dense<0.000000e+00> : vector<2x32xf32>
    %86 = tpu.matmul %84, %57, %cst_43 {dimension_numbers = #tpu.dot_dimension_numbers<[1], [0], [0], [1], [0, 0, 1, 1], [], []>} : vector<2x32xf32>, vector<32x32xf32>, vector<2x32xf32> -> vector<2x32xf32>
    %87 = arith.addf %85, %86 : vector<2x32xf32>
    %88 = math.tanh %87 : vector<2x32xf32>
    %89 = vector.extract_strided_slice %62 {offsets = [12, 0], sizes = [2, 32], strides = [1, 1]} : vector<16x32xf32> to vector<2x32xf32>
    %cst_44 = arith.constant dense<0.000000e+00> : vector<2x32xf32>
    %90 = tpu.matmul %88, %57, %cst_44 {dimension_numbers = #tpu.dot_dimension_numbers<[1], [0], [0], [1], [0, 0, 1, 1], [], []>} : vector<2x32xf32>, vector<32x32xf32>, vector<2x32xf32> -> vector<2x32xf32>
    %91 = arith.addf %89, %90 : vector<2x32xf32>
    %92 = math.tanh %91 : vector<2x32xf32>
    %93 = vector.extract_strided_slice %62 {offsets = [14, 0], sizes = [2, 32], strides = [1, 1]} : vector<16x32xf32> to vector<2x32xf32>
    %cst_45 = arith.constant dense<0.000000e+00> : vector<2x32xf32>
    %94 = tpu.matmul %92, %57, %cst_45 {dimension_numbers = #tpu.dot_dimension_numbers<[1], [0], [0], [1], [0, 0, 1, 1], [], []>} : vector<2x32xf32>, vector<32x32xf32>, vector<2x32xf32> -> vector<2x32xf32>
    %95 = arith.addf %93, %94 : vector<2x32xf32>
    %96 = math.tanh %95 : vector<2x32xf32>
    %c1_46 = arith.constant 1 : index
    %c0_47 = arith.constant 0 : index
    %c0_48 = arith.constant 0 : index
    %97 = vector.load %arg10[%c1_46, %c0_47, %c0_48] : memref<2x2x32xf32, #tpu.memory_space<vmem>>, vector<1x2x32xf32>
    %98 = vector.shape_cast %97 : vector<1x2x32xf32> to vector<2x32xf32>
    %99 = vector.shape_cast %96 : vector<2x32xf32> to vector<1x2x32xf32>
    tpu.vector_store %arg10[%c1_46, %c0_47, %c0_48], %99 {strides = array<i32>} : memref<2x2x32xf32, #tpu.memory_space<vmem>>, vector<1x2x32xf32>,
    %100 = tpu.concatenate %68, %72, %76, %80, %84, %88, %92, %96 in 0 : vector<2x32xf32>, vector<2x32xf32>, vector<2x32xf32>, vector<2x32xf32>, vector<2x32xf32>, vector<2x32xf32>, vector<2x32xf32>, vector<2x32xf32> -> vector<16x32xf32>
    %c0_49 = arith.constant 0 : index
    %c0_50 = arith.constant 0 : index
    %101 = vector.load %arg7[%c0_49, %c0_50] : memref<32x32xf32, #tpu.memory_space<vmem>>, vector<32x32xf32>
    %cst_51 = arith.constant dense<0.000000e+00> : vector<16x32xf32>
    %102 = tpu.matmul %100, %101, %cst_51 {dimension_numbers = #tpu.dot_dimension_numbers<[1], [0], [0], [1], [0, 0, 1, 1], [], []>} : vector<16x32xf32>, vector<32x32xf32>, vector<16x32xf32> -> vector<16x32xf32>
    %c0_52 = arith.constant 0 : index
    %c0_53 = arith.constant 0 : index
    %103 = vector.load %arg8[%c0_52, %c0_53] : memref<1x32xf32, #tpu.memory_space<vmem>>, vector<1x32xf32>
    %104 = vector.broadcast %103 : vector<1x32xf32> to vector<16x32xf32>
    %105 = arith.addf %102, %104 : vector<16x32xf32>
    %c0_54 = arith.constant 0 : index
    %c0_55 = arith.constant 0 : index
    %106 = vector.load %arg9[%c0_54, %c0_55] : memref<16x32xf32, #tpu.memory_space<vmem>>, vector<16x32xf32>
    tpu.vector_store %arg9[%c0_54, %c0_55], %105 {strides = array<i32>} : memref<16x32xf32, #tpu.memory_space<vmem>>, vector<16x32xf32>,
    return
  }
}

</mosaic_0001>

<bundles_post_ra>
// kernel: rnn_hp_forward.1
= control target key start
LH: loop header
LB: loop body
LE: loop exit
PB: predicated region body
PF: predicated region fallthrough
CT: control target
= control target key end

     0   :  { %16 = vsyncpa [#allocation3], 0  ;;  %s2762_s0 = inlined_call_operand.vmem [shape: s32[16,1], index: 0, kind: input, shape index: {}]   ;;  %s2763_s1 = inlined_call_operand.vmem [shape: f32[32,16], index: 1, kind: input, shape index: {}]   ;;  %s2764_s2 = inlined_call_operand.hbm [shape: f32[16,32], index: 2, kind: input, shape index: {}]   ;;  %s2765_s3 = inlined_call_operand.vmem [shape: f32[1,32,32], index: 3, kind: input, shape index: {}]   ;;  %s2766_s4 = inlined_call_operand.vmem [shape: f32[2,32,32], index: 4, kind: input, shape index: {}]   ;;  %s2767_s5 = inlined_call_operand.hbm [shape: f32[2,1,32], index: 5, kind: input, shape index: {}]   ;;  %s2768_s6 = inlined_call_operand.vmem [shape: f32[2,2,32], index: 6, kind: input, shape index: {}]   ;;  %s2769_s7 = inlined_call_operand.hbm [shape: f32[32,32], index: 7, kind: input, shape index: {}]   ;;  %s2770_s8 = inlined_call_operand.hbm [shape: f32[1,32], index: 8, kind: input, shape index: {}]   ;;  %s2771_s9 = inlined_call_operand.vmem [shape: f32[16,32], index: 9, kind: output, shape index: {0}]   ;;  %s2772_s10 = inlined_call_operand.hbm [shape: f32[2,2,32], index: 10, kind: output, shape index: {1}]  }
   0x1   :  { %17 = vsyncpa [#allocation6], 0 }
   0x2   :  { %18 = vsyncpa [#allocation9], 0 }
   0x3   :  { %19 = vsyncpa [#allocation4], 0  ;;  %s2410_s13 = smov [#allocation5]   ;;  %s2292_s17 = scalar_lea.hbm %s2767_s5, 32 }
   0x4   :  { %s45_s14 = sshll.u32 %s2410_s13, 4  ;;  %p2293_p0 = scmp.ne.s32.totalorder %s2767_s5, %s2292_s17  ;;  %s46_s14 = int_to_ptr.vmem [resolvable:$true] %s45_s14 }
   0x5   :  { %p2296_p1 = scmp.lt.u32.totalorder %s2292_s17, %s2767_s5 }
   0x7   :  { %p2298_p2 = pnand %p2296_p1, %p2293_p0 }
   0x9   :  { %2301 = shalt.err (!%p2298_p2)
}
   0xa   :  { %s2302_s22 = scalar_lea.vmem %s46_s14, 32  ;;  %p2307_p4 = scmp.lt.s32.totalorder %s46_s14, %s46_s14 }
   0xb   :  { %p2303_p3 = scmp.ne.s32.totalorder %s46_s14, %s2302_s22  ;;  %p2308_p5 = scmp.lt.s32.totalorder %s2302_s22, %s2302_s22 }
   0xd   :  { %p2309_p6 = por %p2308_p5, %p2307_p4 }
   0xf   :  { %p2310_p7 = pnand %p2309_p6, %p2303_p3 }
  0x11   :  { %2313 = shalt.err (!%p2310_p7)
}
  0x12   :  { %s2411_s23 = smov 16   ;;  %s2412_s24 = smov 1  }
  0x13   :  { %51 = dma.hbm_to_vmem [thread:$0]  %s2767_s5, 32, %s46_s14, [#allocation6], %s2411_s23, %s2411_s23, %s2412_s24  }
  0x14   :  { %s2413_s27 = smov [#allocation2]   ;;  %s2314_s11 = scalar_lea.hbm %s2764_s2, 256 }
  0x15   :  { %s29_s28 = sshll.u32 %s2413_s27, 4  ;;  %p2315_p8 = scmp.ne.s32.totalorder %s2764_s2, %s2314_s11  ;;  %s30_s28 = int_to_ptr.vmem [resolvable:$true] %s29_s28 }
  0x16   :  { %p2318_p9 = scmp.lt.u32.totalorder %s2314_s11, %s2764_s2 }
  0x18   :  { %p2320_p10 = pnand %p2318_p9, %p2315_p8 }
  0x1a   :  { %2323 = shalt.err (!%p2320_p10)
}
  0x1b   :  { %s2324_s17 = scalar_lea.vmem %s30_s28, 256  ;;  %p2329_p12 = scmp.lt.s32.totalorder %s30_s28, %s30_s28 }
  0x1c   :  { %p2325_p11 = scmp.ne.s32.totalorder %s30_s28, %s2324_s17  ;;  %p2330_p13 = scmp.lt.s32.totalorder %s2324_s17, %s2324_s17 }
  0x1e   :  { %p2331_p0 = por %p2330_p13, %p2329_p12 }
  0x20   :  { %p2332_p1 = pnand %p2331_p0, %p2325_p11 }
  0x22   :  { %2335 = shalt.err (!%p2332_p1)
}
  0x23   :  { %s2414_s5 = smov 128   ;;  %s2415_s14 = smov 8  }
  0x24   :  { %35 = dma.hbm_to_vmem [thread:$0]  %s2764_s2, 256, %s30_s28, [#allocation3], %s2414_s5, %s2414_s5, %s2415_s14  }
  0x25   :  { %s2416_s20 = smov [#allocation7]   ;;  %s2417_s22 = smov [#allocation8]  }
  0x26   :  { %s59_s21 = sshll.u32 %s2416_s20, 4  ;;  %s72_s23 = sshll.u32 %s2417_s22, 4  ;;  %s60_s21 = int_to_ptr.vmem [resolvable:$true] %s59_s21  ;;  %s73_s23 = int_to_ptr.vmem [resolvable:$true] %s72_s23 }
  0x27   :  { %s2336_s26 = scalar_lea.hbm %s2769_s7, 512 }
  0x28   :  { %p2337_p2 = scmp.ne.s32.totalorder %s2769_s7, %s2336_s26  ;;  %p2340_p3 = scmp.lt.u32.totalorder %s2336_s26, %s2769_s7 }
  0x2a   :  { %p2342_p4 = pnand %p2340_p3, %p2337_p2 }
  0x2c   :  { %2345 = shalt.err (!%p2342_p4)
}
  0x2d   :  { %s2346_s2 = scalar_lea.vmem %s60_s21, 512  ;;  %p2351_p6 = scmp.lt.s32.totalorder %s60_s21, %s60_s21 }
  0x2e   :  { %p2347_p5 = scmp.ne.s32.totalorder %s60_s21, %s2346_s2  ;;  %p2352_p7 = scmp.lt.s32.totalorder %s2346_s2, %s2346_s2 }
  0x30   :  { %p2353_p8 = por %p2352_p7, %p2351_p6 }
  0x32   :  { %p2354_p9 = pnand %p2353_p8, %p2347_p5 }
  0x34   :  { %2357 = shalt.err (!%p2354_p9)
}
  0x35   :  { %65 = dma.hbm_to_vmem [thread:$0]  %s2769_s7, 512, %s60_s21, [#allocation6], %s2414_s5, %s2414_s5, %s2415_s14  }
  0x36   :  { %s2358_s16 = scalar_lea.hbm %s2770_s8, 16 }
  0x37   :  { %p2359_p10 = scmp.ne.s32.totalorder %s2770_s8, %s2358_s16  ;;  %p2362_p11 = scmp.lt.u32.totalorder %s2358_s16, %s2770_s8 }
  0x39   :  { %p2364_p12 = pnand %p2362_p11, %p2359_p10 }
  0x3b   :  { %2367 = shalt.err (!%p2364_p12)
}
  0x3c   :  { %s2368_s22 = scalar_lea.vmem %s73_s23, 16  ;;  %s2372_s24 = scalar_lea.vmem %s73_s23, 32 }
  0x3d   :  { %p2369_p13 = scmp.ne.s32.totalorder %s73_s23, %s2368_s22  ;;  %p2373_p0 = scmp.lt.s32.totalorder %s73_s23, %s73_s23 }
  0x3e   :  { %p2374_p1 = scmp.lt.s32.totalorder %s2372_s24, %s2368_s22 }
  0x40   :  { %p2375_p2 = por %p2374_p1, %p2373_p0 }
  0x42   :  { %p2376_p3 = pnand %p2375_p2, %p2369_p13 }
  0x44   :  { %2379 = shalt.err (!%p2376_p3)
}
  0x45   :  { %75 = dma.hbm_to_vmem [thread:$0]  %s2770_s8, 16, %s73_s23, [#allocation9]  }
  0x46   :  { %2402 = dma.done.wait [#allocation3], 256  }
  0x47   :  { %2403 = vsyncadd [#allocation3], 4294967040 }
  0x48   :  { %2404 = dma.done.wait [#allocation6], 544  }
  0x49   :  { %2405 = vsyncadd [#allocation6], 4294966752 }
  0x4a   :  { %2406 = dma.done.wait [#allocation9], 16  }
  0x4b   :  { %2407 = vsyncadd [#allocation9], 4294967280  ;;  %v2418_v0 = vmov 0   ;;  %v88_v1 = vld [vmem:[%s2762_s0] sm:$0xff]  ;;  %v105_v3 = vld [vmem:[%s2763_s1 + $0x8] sm:$0xff]  ;;  %v90_v12 = vlaneseq  ;;  %vm108_vm0 = vcmask 261120  }
  0x4c   :  { %2259 = vset.pattern.permute.xlu0 %v2418_v0  ;;  %v104_v2 = vld [vmem:[%s2763_s1] sm:$0xff]  ;;  %v106_v4 = vld [vmem:[%s2763_s1 + $0x10] sm:$0xff]  ;;  %v107_v5 = vld [vmem:[%s2763_s1 + $0x18] sm:$0xff]  ;;  %v2419_v15 = vmov 0.0   ;;  %v2420_v22 = vmov 0.0|0.0   ;;  %vm2421_vm3 = vmmov 0  }
  0x4d   :  { %93 = vperm.xlu0 %2259, %v88_v1   ;;  %v89_v6 = vld [vmem:[%s2762_s0 + $0x8] sm:$0xff]  ;;  %v2120_v7 = vpack.c.bf16 %v105_v3, %v104_v2  ;;  %v2124_v8 = vpack.c.bf16 %v107_v5, %v106_v4  ;;  %v190_v9 = vld [vmem:[#allocation2] sm:$0xff]  ;;  %v91_v13 = vand.u32 127, %v90_v12  ;;  %v194_v23 = vld [vmem:[%s2766_s4 + $0x10] sm:$0xff]  ;;  %vm203_vm4 = vcmask 130048  }
  0x4e   :  { %v191_v10 = vld [vmem:[#allocation2 + $0x8] sm:$0xff]  ;;  %v192_v19 = vld [vmem:[%s2766_s4] sm:$0xff]  ;;  %v195_v24 = vld [vmem:[%s2766_s4 + $0x18] sm:$0xff]  ;;  %vm911_vm5 = vcmask 1041408   ;;  %vm913_vm6 = vcmask 1043456   ;;  %vm915_vm7 = vcmask 1045504  }
  0x4f   :  { %2121 = vmatprep.subr.bf16.mxu0 %v2120_v7  ;;  %v2128_v11 = vpack.c.bf16 %v191_v10, %v190_v9  ;;  %v193_v20 = vld [vmem:[%s2766_s4 + $0x8] sm:$0xff]  ;;  %v2568_v25 = vpack.c.bf16 %v195_v24, %v194_v23  ;;  %v285_v28 = vld [vmem:[%s2768_s6] sm:$0x3]  ;;  %v1772_v29 = vld [vmem:[#allocation5] ss:$0 sm:$0xff]  ;;  %vm909_vm8 = vcmask 261126  }
  0x50   :  { %2123 = vmatpush3.bf16.msra.mxu0 %v2120_v7  ;;  %v2556_v21 = vpack.c.bf16 %v193_v20, %v192_v19  ;;  %v922_v19 = vld [vmem:[%s2765_s3 + $0x10] sm:$0xff]  ;;  %v923_v20 = vld [vmem:[%s2765_s3 + $0x18] sm:$0xff] }
  0x51   :  { %96 = vperm.xlu0 %2259, %v89_v6   ;;  %2125 = vmatprep.subr.bf16.mxu0 %v2124_v8  ;;  %v2184_v23 = vpack.c.bf16 %v923_v20, %v922_v19  ;;  %v1785_v24 = vld [vmem:[%s2766_s4 + $0x30] sm:$0xff]  ;;  %v1653_v19 = vld [vmem:[#allocation7 + $0x10] sm:$0xff] }
  0x52   :  { %2129 = vmatprep.subr.bf16.mxu1 %v2128_v11 }
  0x53   :  { %2131 = vmatpush3.bf16.msra.mxu1 %v2128_v11 }
  0x54   :  { %2127 = vmatpush3.bf16.msra.mxu0 %v2124_v8  ;;  %2132 = vmatprep.subr.bf16.mxu1 %v2420_v22 }
  0x55   :  { %2138 = vmatprep.subr.bf16.mxu0 %v2420_v22 }
  0xcc   :  { %v94_v14 = vpop.permute.xlu0 %93 }
  0xcd   :  { %vm98_vm1 = vcmp.eq.s32.totalorder %v91_v13, %v94_v14  ;;  %v921_v14 = vld [vmem:[%s2765_s3 + $0x8] sm:$0xff] }
  0xce   :  { %v1768_v16 = vsel %vm98_vm1, 1.0, %v2419_v15 }
  0xcf   :  { %1912 = vmatprep.mubr.msk.f32.mxu0 %vm108_vm0, %v1768_v16  ;;  %v1783_v16 = vld [vmem:[%s2766_s4 + $0x20] sm:$0xff] }
  0xd0   :  { %v97_v17 = vpop.permute.xlu0 %96 }
  0xd1   :  { %vm99_vm2 = vcmp.eq.s32.totalorder %v91_v13, %v97_v17  ;;  %v920_v13 = vld [vmem:[%s2765_s3] sm:$0xff] }
  0xd2   :  { %v1769_v18 = vsel %vm99_vm2, 1.0, %v2419_v15  ;;  %v2180_v17 = vpack.c.bf16 %v921_v14, %v920_v13 }
  0xd3   :  { %1913 = vmatmul.mubr.msk.f32.vlgmr.msra.gmra.mrb[0].mxu0 %vm108_vm0, %v1769_v18  ;;  %v1784_v18 = vld [vmem:[%s2766_s4 + $0x28] sm:$0xff] }
  0xd4   :  { %2140 = vmatpush3.bf16.msra.mxu0 %v2556_v21  ;;  %1941 = vmatprep.mubr.msk.f32.mxu0 %vm2421_vm3, %v2419_v15 }
  0xd5   :  { %2141 = vmatprep.subr.bf16.mxu0 %v2420_v22 }
  0xd8   :  { %2143 = vmatpush3.bf16.msra.mxu0 %v2568_v25 }
  0xd9   :  { %2150 = vmatprep.subr.bf16.mxu0 %v2420_v22 }
 0x1a6   :  { %v1914_v26 = vpop.f32.mrb[0].mxu0 }
 0x1a7   :  { %v181_v27 = vpop.f32.mrb[1].mxu0 }
 0x1a8   :  { %1919 = vmatprep.mubr.msk.f32.mxu1 %vm203_vm4, %v181_v27  ;;  %v1790_v27 = vld [vmem:[%s2768_s6 + $0x2] sm:$0x3] }
 0x1a9   :  { %1920 = vmatmul.mubr.msk.f32.vlgmr.msra.gmra.mrb[0].mxu1 %vm203_vm4, %v1914_v26 }
 0x1aa   :  { %2134 = vmatpush3.bf16.msra.mxu1 %v2556_v21  ;;  %1930 = vmatprep.mubr.msk.f32.mxu1 %vm2421_vm3, %v2419_v15 }
 0x1ab   :  { %2135 = vmatprep.subr.bf16.mxu1 %v2420_v22 }
 0x1ae   :  { %2137 = vmatpush3.bf16.msra.mxu1 %v2568_v25 }
 0x1af   :  { %2144 = vmatprep.subr.bf16.mxu1 %v2420_v22 }
 0x1b1   :  { %1931 = vmatmul.mubr.msk.f32.vlgmr.msra.gmra.mrb[2].mxu1 %vm108_vm0, %v285_v28 }
 0x1b2   :  { %2146 = vmatpush3.bf16.msra.mxu1 %v2556_v21  ;;  %1952 = vmatprep.mubr.msk.f32.mxu1 %vm2421_vm3, %v2419_v15 }
 0x1b3   :  { %2147 = vmatprep.subr.bf16.mxu1 %v2420_v22 }
 0x1b6   :  { %2149 = vmatpush3.bf16.msra.mxu1 %v2568_v25 }
 0x1b7   :  { %2156 = vmatprep.subr.bf16.mxu1 %v2420_v22 }
 0x27c   :  { %v1921_v30 = vpop.f32.mrb[0].mxu1 }
 0x27d   :  { %v2590_v31 = vadd.f32 %v1921_v30, %v1772_v29  ;;  %v276_v32 = vpop.f32.mrb[1].mxu1 }
 0x27e   :  { %v277_v33 = vadd.f32 %v1772_v29, %v276_v32 }
 0x284   :  { %v355_v34 = vpop.f32.mrb[2].mxu1 }
 0x285   :  { %v359_v35 = vadd.f32 %v355_v34, %v277_v33  ;;  %v1932_v36 = vpop.f32.mrb[3].mxu1 }
 0x286   :  { %v1787_v36 = vld [vmem:[#allocation5 + $0x1] ss:$0 sm:$0xff] }
 0x287   :  { %2260 = vtanh.f32 %v359_v35 }
 0x291   :  { %v2261_v37 = vpop.eup %2260 }
 0x292   :  { %1942 = vmatmul.mubr.msk.f32.vlgmr.msra.gmra.mrb[2].mxu0 %vm108_vm0, %v2261_v37 }
 0x293   :  { %2152 = vmatpush3.bf16.msra.mxu0 %v2556_v21  ;;  %1963 = vmatprep.mubr.msk.f32.mxu0 %vm2421_vm3, %v2419_v15 }
 0x294   :  { %2153 = vmatprep.subr.bf16.mxu0 %v2420_v22 }
 0x297   :  { %2155 = vmatpush3.bf16.msra.mxu0 %v2568_v25 }
 0x298   :  { %2162 = vmatprep.subr.bf16.mxu0 %v2420_v22 }
 0x365   :  { %v430_v38 = vpop.f32.mrb[2].mxu0 }
 0x366   :  { %v435_v39 = vrot.slane %v430_v38, 6  ;;  %v1943_v40 = vpop.f32.mrb[3].mxu0 }
 0x368   :  { %v437_v41 = vadd.f32 %v435_v39, %v277_v33 }
 0x36a   :  { %2262 = vtanh.f32 %v437_v41 }
 0x374   :  { %v2263_v42 = vpop.eup %2262 }
 0x375   :  { %v440_v43 = vrot.slane %v2263_v42, 2  ;;  %v912_v49 = vsel %vm911_vm5, %v2261_v37, %v2263_v42 }
 0x377   :  { %1953 = vmatmul.mubr.msk.f32.vlgmr.msra.gmra.mrb[4].mxu1 %vm108_vm0, %v440_v43 }
 0x378   :  { %2158 = vmatpush3.bf16.msra.mxu1 %v2556_v21  ;;  %1974 = vmatprep.mubr.msk.f32.mxu1 %vm2421_vm3, %v2419_v15 }
 0x379   :  { %2159 = vmatprep.subr.bf16.mxu1 %v2420_v22 }
 0x37c   :  { %2161 = vmatpush3.bf16.msra.mxu1 %v2568_v25 }
 0x37d   :  { %2168 = vmatprep.subr.bf16.mxu1 %v2420_v22 }
 0x44a   :  { %v509_v44 = vpop.f32.mrb[4].mxu1 }
 0x44b   :  { %v514_v45 = vrot.slane %v509_v44, 4  ;;  %v1954_v46 = vpop.f32.mrb[5].mxu1 }
 0x44d   :  { %v516_v47 = vadd.f32 %v514_v45, %v277_v33 }
 0x44f   :  { %2264 = vtanh.f32 %v516_v47 }
 0x459   :  { %v2265_v48 = vpop.eup %2264 }
 0x45a   :  { %v519_v50 = vrot.slane %v2265_v48, 4  ;;  %v914_v51 = vsel %vm913_vm6, %v912_v49, %v2265_v48 }
 0x45c   :  { %1964 = vmatmul.mubr.msk.f32.vlgmr.msra.gmra.mrb[4].mxu0 %vm108_vm0, %v519_v50 }
 0x45d   :  { %2164 = vmatpush3.bf16.msra.mxu0 %v2556_v21  ;;  %1985 = vmatprep.mubr.msk.f32.mxu0 %vm2421_vm3, %v2419_v15 }
 0x45e   :  { %2165 = vmatprep.subr.bf16.mxu0 %v2420_v22 }
 0x461   :  { %2167 = vmatpush3.bf16.msra.mxu0 %v2568_v25 }
 0x462   :  { %2174 = vmatprep.subr.bf16.mxu0 %v2420_v22 }
 0x52f   :  { %v588_v52 = vpop.f32.mrb[4].mxu0 }
 0x530   :  { %v593_v53 = vrot.slane %v588_v52, 2  ;;  %v1965_v54 = vpop.f32.mrb[5].mxu0 }
 0x532   :  { %v595_v55 = vadd.f32 %v593_v53, %v277_v33 }
 0x534   :  { %2266 = vtanh.f32 %v595_v55 }
 0x53e   :  { %v2267_v56 = vpop.eup %2266 }
 0x53f   :  { %v598_v57 = vrot.slane %v2267_v56, 6  ;;  %v916_v58 = vsel %vm915_vm7, %v914_v51, %v2267_v56 }
 0x541   :  { %1975 = vmatmul.mubr.msk.f32.vlgmr.msra.gmra.mrb[6].mxu1 %vm108_vm0, %v598_v57 }
 0x542   :  { %2170 = vmatpush3.bf16.msra.mxu1 %v2556_v21  ;;  %1996 = vmatprep.mubr.msk.f32.mxu1 %vm2421_vm3, %v2419_v15 }
 0x543   :  { %2171 = vmatprep.subr.bf16.mxu1 %v2420_v22 }
 0x546   :  { %2173 = vmatpush3.bf16.msra.mxu1 %v2568_v25 }
 0x547   :  { %2181 = vmatprep.subr.bf16.mxu1 %v2180_v17 }
 0x614   :  { %v667_v59 = vpop.f32.mrb[6].mxu1 }
 0x615   :  { %v671_v60 = vadd.f32 %v667_v59, %v2590_v31  ;;  %v1976_v61 = vpop.f32.mrb[7].mxu1 }
 0x617   :  { %2268 = vtanh.f32 %v671_v60 }
 0x621   :  { %v2269_v62 = vpop.eup %2268 }
 0x622   :  { %1986 = vmatmul.mubr.msk.f32.vlgmr.msra.gmra.mrb[6].mxu0 %vm108_vm0, %v2269_v62 }
 0x623   :  { %2176 = vmatpush3.bf16.msra.mxu0 %v2556_v21  ;;  %2007 = vmatprep.mubr.msk.f32.mxu0 %vm2421_vm3, %v2419_v15  ;;  %v2657_v21 = vpack.c.bf16 %v1784_v18, %v1783_v16  ;;  %v1652_v18 = vld [vmem:[#allocation7 + $0x8] sm:$0xff] }
 0x624   :  { %2177 = vmatprep.subr.bf16.mxu0 %v2420_v22 }
 0x627   :  { %2179 = vmatpush3.bf16.msra.mxu0 %v2568_v25  ;;  %v1786_v25 = vld [vmem:[%s2766_s4 + $0x38] sm:$0xff]  ;;  %s2422_s4 = smov [#allocation10]  }
 0x628   :  { %2188 = vmatprep.subr.bf16.mxu0 %v2420_v22  ;;  %v2666_v26 = vpack.c.bf16 %v1786_v25, %v1785_v24  ;;  %s1752_s6 = sshll.u32 %s2422_s4, 4  ;;  %s1753_s6 = int_to_ptr.vmem [resolvable:$true] %s1752_s6 }
 0x629   :  { %s2380_s1 = scalar_lea.vmem %s1753_s6, 64  ;;  %p2385_p5 = scmp.lt.s32.totalorder %s1753_s6, %s1753_s6 }
 0x62a   :  { %p2381_p4 = scmp.ne.s32.totalorder %s1753_s6, %s2380_s1  ;;  %p2386_p6 = scmp.lt.s32.totalorder %s2380_s1, %s2380_s1 }
 0x62c   :  { %p2387_p7 = por %p2386_p6, %p2385_p5 }
 0x62e   :  { %p2388_p8 = pnand %p2387_p7, %p2381_p4 }
 0x6f5   :  { %v742_v63 = vpop.f32.mrb[6].mxu0 }
 0x6f6   :  { %v747_v0 = vrot.slane %v742_v63, 6  ;;  %v1987_v1 = vpop.f32.mrb[7].mxu0 }
 0x6f8   :  { %v749_v2 = vadd.f32 %v747_v0, %v2590_v31 }
 0x6fa   :  { %2270 = vtanh.f32 %v749_v2 }
 0x704   :  { %v2271_v3 = vpop.eup %2270 }
 0x705   :  { %v752_v4 = vrot.slane %v2271_v3, 2  ;;  %v917_v10 = vsel %vm911_vm5, %v2269_v62, %v2271_v3 }
 0x707   :  { %1997 = vmatmul.mubr.msk.f32.vlgmr.msra.gmra.mrb[8].mxu1 %vm108_vm0, %v752_v4 }
 0x708   :  { %2018 = vmatprep.mubr.msk.f32.mxu1 %vm108_vm0, %v916_v58  ;;  %2183 = vmatpush3.bf16.msra.mxu1 %v2180_v17  ;;  %v1651_v17 = vld [vmem:[#allocation7] sm:$0xff] }
 0x709   :  { %2185 = vmatprep.subr.bf16.mxu1 %v2184_v23  ;;  %v2236_v20 = vpack.c.bf16 %v1652_v18, %v1651_v17 }
 0x70c   :  { %2187 = vmatpush3.bf16.msra.mxu1 %v2184_v23 }
 0x70d   :  { %2194 = vmatprep.subr.bf16.mxu1 %v2420_v22 }
 0x7da   :  { %v821_v5 = vpop.f32.mrb[8].mxu1 }
 0x7db   :  { %v826_v6 = vrot.slane %v821_v5, 4  ;;  %v1998_v7 = vpop.f32.mrb[9].mxu1 }
 0x7dd   :  { %v828_v8 = vadd.f32 %v826_v6, %v2590_v31 }
 0x7df   :  { %2272 = vtanh.f32 %v828_v8 }
 0x7e9   :  { %v2273_v9 = vpop.eup %2272 }
 0x7ea   :  { %v831_v11 = vrot.slane %v2273_v9, 4  ;;  %v918_v12 = vsel %vm913_vm6, %v917_v10, %v2273_v9 }
 0x7ec   :  { %2008 = vmatmul.mubr.msk.f32.vlgmr.msra.gmra.mrb[8].mxu0 %vm108_vm0, %v831_v11 }
 0x7ed   :  { %2029 = vmatprep.mubr.msk.f32.mxu0 %vm2421_vm3, %v2419_v15  ;;  %2190 = vmatpush3.bf16.msra.mxu0 %v2657_v21 }
 0x7ee   :  { %2191 = vmatprep.subr.bf16.mxu0 %v2420_v22 }
 0x7f1   :  { %2193 = vmatpush3.bf16.msra.mxu0 %v2666_v26 }
 0x7f2   :  { %2200 = vmatprep.subr.bf16.mxu0 %v2420_v22 }
 0x7f4   :  { %2030 = vmatmul.mubr.msk.f32.vlgmr.msra.gmra.mrb[10].mxu0 %vm108_vm0, %v1790_v27 }
 0x7f5   :  { %2202 = vmatpush3.bf16.msra.mxu0 %v2657_v21  ;;  %2051 = vmatprep.mubr.msk.f32.mxu0 %vm2421_vm3, %v2419_v15 }
 0x7f6   :  { %2203 = vmatprep.subr.bf16.mxu0 %v2420_v22 }
 0x7f9   :  { %2205 = vmatpush3.bf16.msra.mxu0 %v2666_v26 }
 0x7fa   :  { %2212 = vmatprep.subr.bf16.mxu0 %v2420_v22 }
 0x8bf   :  { %v900_v28 = vpop.f32.mrb[8].mxu0 }
 0x8c0   :  { %v905_v29 = vrot.slane %v900_v28, 2  ;;  %v2009_v30 = vpop.f32.mrb[9].mxu0 }
 0x8c2   :  { %v907_v32 = vadd.f32 %v905_v29, %v2590_v31 }
 0x8c4   :  { %2274 = vtanh.f32 %v907_v32 }
 0x8c7   :  { %v1089_v31 = vpop.f32.mrb[10].mxu0 }
 0x8c8   :  { %v2031_v35 = vpop.f32.mrb[11].mxu0 }
 0x8ce   :  { %v2275_v33 = vpop.eup %2274 }
 0x8cf   :  { %v919_v34 = vsel %vm915_vm7, %v918_v12, %v2275_v33  ;;  %910 = vst.msk [vmem:[#allocation10 - $0x6] sm:$0xc0] %vm909_vm8, %v2275_v33 }
 0x8d0   :  { %2019 = vmatmul.mubr.msk.f32.vlgmr.msra.gmra.mrb[10].mxu1 %vm108_vm0, %v919_v34 }
 0x8d1   :  { %2196 = vmatpush3.bf16.msra.mxu1 %v2657_v21  ;;  %2040 = vmatprep.mubr.msk.f32.mxu1 %vm2421_vm3, %v2419_v15 }
 0x8d2   :  { %2197 = vmatprep.subr.bf16.mxu1 %v2420_v22 }
 0x8d5   :  { %2199 = vmatpush3.bf16.msra.mxu1 %v2666_v26 }
 0x8d6   :  { %2206 = vmatprep.subr.bf16.mxu1 %v2420_v22 }
 0x9a3   :  { %v2020_v37 = vpop.f32.mrb[10].mxu1 }
 0x9a4   :  { %v2692_v38 = vadd.f32 %v2020_v37, %v1787_v36  ;;  %v1009_v39 = vpop.f32.mrb[11].mxu1 }
 0x9a5   :  { %v1010_v40 = vadd.f32 %v1787_v36, %v1009_v39 }
 0x9a7   :  { %v1093_v41 = vadd.f32 %v1089_v31, %v1010_v40 }
 0x9a9   :  { %2276 = vtanh.f32 %v1093_v41 }
 0x9b3   :  { %v2277_v42 = vpop.eup %2276 }
 0x9b4   :  { %2041 = vmatmul.mubr.msk.f32.vlgmr.msra.gmra.mrb[12].mxu1 %vm108_vm0, %v2277_v42 }
 0x9b5   :  { %2208 = vmatpush3.bf16.msra.mxu1 %v2657_v21  ;;  %2062 = vmatprep.mubr.msk.f32.mxu1 %vm2421_vm3, %v2419_v15 }
 0x9b6   :  { %2209 = vmatprep.subr.bf16.mxu1 %v2420_v22 }
 0x9b9   :  { %2211 = vmatpush3.bf16.msra.mxu1 %v2666_v26 }
 0x9ba   :  { %2218 = vmatprep.subr.bf16.mxu1 %v2420_v22 }
 0xa87   :  { %v1164_v43 = vpop.f32.mrb[12].mxu1 }
 0xa88   :  { %v1169_v44 = vrot.slane %v1164_v43, 6  ;;  %v2042_v45 = vpop.f32.mrb[13].mxu1 }
 0xa8a   :  { %v1171_v46 = vadd.f32 %v1169_v44, %v1010_v40 }
 0xa8c   :  { %2278 = vtanh.f32 %v1171_v46 }
 0xa96   :  { %v2279_v47 = vpop.eup %2278 }
 0xa97   :  { %v1174_v48 = vrot.slane %v2279_v47, 2  ;;  %v1645_v54 = vsel %vm911_vm5, %v2277_v42, %v2279_v47 }
 0xa99   :  { %2052 = vmatmul.mubr.msk.f32.vlgmr.msra.gmra.mrb[12].mxu0 %vm108_vm0, %v1174_v48 }
 0xa9a   :  { %2214 = vmatpush3.bf16.msra.mxu0 %v2657_v21  ;;  %2073 = vmatprep.mubr.msk.f32.mxu0 %vm2421_vm3, %v2419_v15 }
 0xa9b   :  { %2215 = vmatprep.subr.bf16.mxu0 %v2420_v22 }
 0xa9e   :  { %2217 = vmatpush3.bf16.msra.mxu0 %v2666_v26 }
 0xa9f   :  { %2224 = vmatprep.subr.bf16.mxu0 %v2420_v22 }
 0xb6c   :  { %v1243_v49 = vpop.f32.mrb[12].mxu0 }
 0xb6d   :  { %v1248_v50 = vrot.slane %v1243_v49, 4  ;;  %v2053_v51 = vpop.f32.mrb[13].mxu0 }
 0xb6f   :  { %v1250_v52 = vadd.f32 %v1248_v50, %v1010_v40 }
 0xb71   :  { %2280 = vtanh.f32 %v1250_v52 }
 0xb7b   :  { %v2281_v53 = vpop.eup %2280 }
 0xb7c   :  { %v1253_v55 = vrot.slane %v2281_v53, 4  ;;  %v1646_v56 = vsel %vm913_vm6, %v1645_v54, %v2281_v53 }
 0xb7e   :  { %2063 = vmatmul.mubr.msk.f32.vlgmr.msra.gmra.mrb[14].mxu1 %vm108_vm0, %v1253_v55 }
 0xb7f   :  { %2220 = vmatpush3.bf16.msra.mxu1 %v2657_v21  ;;  %2084 = vmatprep.mubr.msk.f32.mxu1 %vm2421_vm3, %v2419_v15 }
 0xb80   :  { %2221 = vmatprep.subr.bf16.mxu1 %v2420_v22 }
 0xb83   :  { %2223 = vmatpush3.bf16.msra.mxu1 %v2666_v26 }
 0xb84   :  { %2230 = vmatprep.subr.bf16.mxu1 %v2420_v22 }
 0xc51   :  { %v1322_v57 = vpop.f32.mrb[14].mxu1 }
 0xc52   :  { %v1327_v58 = vrot.slane %v1322_v57, 2  ;;  %v2064_v59 = vpop.f32.mrb[15].mxu1 }
 0xc54   :  { %v1329_v60 = vadd.f32 %v1327_v58, %v1010_v40 }
 0xc56   :  { %2282 = vtanh.f32 %v1329_v60 }
 0xc60   :  { %v2283_v61 = vpop.eup %2282 }
 0xc61   :  { %v1332_v62 = vrot.slane %v2283_v61, 6  ;;  %v1647_v63 = vsel %vm915_vm7, %v1646_v56, %v2283_v61 }
 0xc63   :  { %2074 = vmatmul.mubr.msk.f32.vlgmr.msra.gmra.mrb[14].mxu0 %vm108_vm0, %v1332_v62 }
 0xc64   :  { %2226 = vmatpush3.bf16.msra.mxu0 %v2657_v21  ;;  %2095 = vmatprep.mubr.msk.f32.mxu0 %vm2421_vm3, %v2419_v15 }
 0xc65   :  { %2227 = vmatprep.subr.bf16.mxu0 %v2420_v22 }
 0xc68   :  { %2229 = vmatpush3.bf16.msra.mxu0 %v2666_v26 }
 0xc69   :  { %2237 = vmatprep.subr.bf16.mxu0 %v2236_v20 }
 0xd36   :  { %v1401_v0 = vpop.f32.mrb[14].mxu0 }
 0xd37   :  { %v1405_v1 = vadd.f32 %v1401_v0, %v2692_v38  ;;  %v2075_v2 = vpop.f32.mrb[15].mxu0 }
 0xd39   :  { %2284 = vtanh.f32 %v1405_v1 }
 0xd43   :  { %v2285_v3 = vpop.eup %2284 }
 0xd44   :  { %2085 = vmatmul.mubr.msk.f32.vlgmr.msra.gmra.mrb[16].mxu1 %vm108_vm0, %v2285_v3 }
 0xd45   :  { %2232 = vmatpush3.bf16.msra.mxu1 %v2657_v21  ;;  %2106 = vmatprep.mubr.msk.f32.mxu1 %vm2421_vm3, %v2419_v15  ;;  %v1654_v21 = vld [vmem:[#allocation7 + $0x18] sm:$0xff] }
 0xd46   :  { %2233 = vmatprep.subr.bf16.mxu1 %v2420_v22  ;;  %v2240_v23 = vpack.c.bf16 %v1654_v21, %v1653_v19 }
 0xd49   :  { %2235 = vmatpush3.bf16.msra.mxu1 %v2666_v26 }
 0xe17   :  { %v1476_v4 = vpop.f32.mrb[16].mxu1 }
 0xe18   :  { %v1481_v5 = vrot.slane %v1476_v4, 6  ;;  %v2086_v6 = vpop.f32.mrb[17].mxu1 }
 0xe1a   :  { %v1483_v7 = vadd.f32 %v1481_v5, %v2692_v38 }
 0xe1c   :  { %2286 = vtanh.f32 %v1483_v7 }
 0xe26   :  { %v2287_v8 = vpop.eup %2286 }
 0xe27   :  { %v1486_v9 = vrot.slane %v2287_v8, 2  ;;  %v1648_v13 = vsel %vm911_vm5, %v2285_v3, %v2287_v8 }
 0xe29   :  { %2096 = vmatmul.mubr.msk.f32.vlgmr.msra.gmra.mrb[16].mxu0 %vm108_vm0, %v1486_v9 }
 0xe2a   :  { %2117 = vmatprep.mubr.msk.f32.mxu0 %vm108_vm0, %v1647_v63  ;;  %2239 = vmatpush3.bf16.msra.mxu0 %v2236_v20 }
 0xe2b   :  { %2241 = vmatprep.subr.bf16.mxu0 %v2240_v23 }
 0xe2e   :  { %2243 = vmatpush3.bf16.msra.mxu0 %v2240_v23 }
 0xefc   :  { %v1555_v10 = vpop.f32.mrb[16].mxu0 }
 0xefd   :  { %v1560_v11 = vrot.slane %v1555_v10, 4  ;;  %v2097_v12 = vpop.f32.mrb[17].mxu0 }
 0xeff   :  { %v1562_v15 = vadd.f32 %v1560_v11, %v2692_v38 }
 0xf01   :  { %2288 = vtanh.f32 %v1562_v15 }
 0xf0b   :  { %v2289_v22 = vpop.eup %2288 }
 0xf0c   :  { %v1565_v14 = vrot.slane %v2289_v22, 4  ;;  %v1649_v16 = vsel %vm913_vm6, %v1648_v13, %v2289_v22 }
 0xf0e   :  { %2107 = vmatmul.mubr.msk.f32.vlgmr.msra.gmra.mrb[18].mxu1 %vm108_vm0, %v1565_v14 }
 0xfe1   :  { %v1634_v24 = vpop.f32.mrb[18].mxu1 }
 0xfe2   :  { %v1639_v25 = vrot.slane %v1634_v24, 2  ;;  %v2108_v26 = vpop.f32.mrb[19].mxu1 }
 0xfe4   :  { %v1641_v27 = vadd.f32 %v1639_v25, %v2692_v38 }
 0xfe6   :  { %2290 = vtanh.f32 %v1641_v27 }
 0xff0   :  { %v2291_v28 = vpop.eup %2290 }
 0xff1   :  { %v1650_v29 = vsel %vm915_vm7, %v1649_v16, %v2291_v28  ;;  %1644 = vst.msk [vmem:[#allocation10 - $0x4] sm:$0xc0] %vm909_vm8, %v2291_v28 }
 0xff2   :  { %2118 = vmatmul.mubr.msk.f32.vlgmr.msra.gmra.mrb[18].mxu0 %vm108_vm0, %v1650_v29 }
 0xff3   :  { %2391 = shalt.err (!%p2388_p8)
}
 0xff4   :  { %s2392_s15 = scalar_lea.hbm %s2772_s10, 64 }
 0xff5   :  { %p2393_p9 = scmp.ne.s32.totalorder %s2772_s10, %s2392_s15  ;;  %p2396_p10 = scmp.lt.u32.totalorder %s2392_s15, %s2772_s10 }
 0xff7   :  { %p2398_p11 = pnand %p2396_p10, %p2393_p9 }
 0xff9   :  { %2401 = shalt.err (!%p2398_p11)
}
 0xffa   :  { %s2423_s20 = smov 32   ;;  %s2424_s22 = smov 2   ;;  %v1799_v30 = vld [vmem:[#allocation8] ss:$0 sm:$0xff] }
 0xffb   :  { %1758 = dma.vmem_to_hbm [thread:$0]  %s1753_s6, 64, %s2772_s10, [#allocation4], %s2423_s20, %s2423_s20, %s2424_s22  }
0x10c5   :  { %v2119_v32 = vpop.f32.mrb[18].mxu0 }
0x10c6   :  { %v1740_v33 = vadd.f32 %v2119_v32, %v1799_v30  ;;  %v1734_v34 = vpop.f32.mrb[19].mxu0 }
0x10c7   :  { %v1735_v31 = vadd.f32 %v1799_v30, %v1734_v34 }
0x10c8   :  { %1744 = vst.msk [vmem:[%s2771_s9 + $0x8] sm:$0xff] %vm108_vm0, %v1740_v33 }
0x10c9   :  { %1743 = vst.msk [vmem:[%s2771_s9] sm:$0xff] %vm108_vm0, %v1735_v31 }
0x10ca   :  { %2408 = dma.done.wait [#allocation4], 64  }
0x10cb   :  { %2409 = vsyncadd [#allocation4], 4294967232 }
0x10cc   :  { %1764 = vsyncpa [#allocation3], 1 }
0x10cd   :  { %1765 = vsyncpa [#allocation6], 1 }
0x10ce   :  { %1766 = vsyncpa [#allocation9], 1 }
0x10cf   :  { %1767 = vsyncpa [#allocation4], 1 }

</bundles_post_ra>
